<compile_context>
chip_gen: v6e
topology: v6e:2x2x1
jax: 0.10.0
libtpu: 0.0.40
codegen_flags: <defaults>
</compile_context>

<pallas_src>
import functools

import jax
import jax.numpy as jnp
from jax.experimental import pallas as pl
from jax.experimental.pallas import tpu as pltpu


# ----------------------------------------------------------------------------
# Kernel
# ----------------------------------------------------------------------------
def _swish_kernel(x_ref, o_ref, *, beta):
    x = x_ref[...]
    # Upcast narrow dtypes to f32 for accuracy parity (free: kernel is
    # HBM-bound, only vreg pressure grows). f32 stays f32 (weak-type beta).
    if jnp.dtype(x.dtype).itemsize < 4:
        x = x.astype(jnp.float32)
    o_ref[...] = (x * jax.nn.sigmoid(x * beta)).astype(o_ref.dtype)


# ----------------------------------------------------------------------------
# Generation-aware configuration
# ----------------------------------------------------------------------------
def _chip_config():
    """Returns (target_block_bytes, vmem_limit_bytes_or_None, num_tensorcores)."""
    kind = ""
    try:
        kind = (jax.devices()[0].device_kind or "").lower()
    except Exception:
        pass

    if "v7" in kind:
        cfg = (6 << 20, 48 << 20, 2)          # 2 TCs/chip, 64 MiB physical VMEM
    elif "v6" in kind:
        cfg = (6 << 20, 48 << 20, 1)          # 1 TC, 128 MiB VMEM
    elif "v5e" in kind or "v5 lite" in kind or "v5lite" in kind:
        cfg = (3 << 20, None, 1)              # 1 TC, 16 MiB default scoped VMEM
    elif "v4" in kind or "v5" in kind:
        cfg = (3 << 20, None, 2)              # v4 / v5p megacore: 2 TCs
    else:
        cfg = (2 << 20, None, 1)              # unknown: previously-safe default

    target, vmem_limit, cores = cfg
    # Defensive clamp against the actually-reported VMEM capacity, if queryable.
    try:
        cap = int(pltpu.get_tpu_info().vmem_capacity_bytes)
        target = min(target, max(1 << 20, cap // 8))
        if vmem_limit is not None:
            vmem_limit = min(vmem_limit, (cap * 3) // 4)
    except Exception:
        pass
    return target, vmem_limit, cores


# ----------------------------------------------------------------------------
# Pallas path for a 128-aligned flat array
# ----------------------------------------------------------------------------
def _swish_flat_aligned(xf: jnp.ndarray, beta: float) -> jnp.ndarray:
    n_work = xf.shape[0]                      # multiple of 128 by construction
    dtype = xf.dtype
    itemsize = jnp.dtype(dtype).itemsize
    sublane = max(8, 32 // max(1, itemsize))  # 8 f32 / 16 bf16 / 32 int8
    target_bytes, vmem_limit, num_cores = _chip_config()

    # Widest lane dim (multiple of 128) that divides the element count and
    # leaves >= one native sublane group of rows; fall back to 128.
    lane = 128
    for cand in (2048, 1024, 512, 256):
        if n_work % cand == 0 and (n_work // cand) >= sublane:
            lane = cand
            break
    rows = n_work // lane
    x2 = jnp.reshape(xf, (rows, lane))        # row-major reshape: no copy

    if rows <= sublane:
        tile_rows = rows                      # single full-array block (legal)
    else:
        # ~target_bytes per block, rounded to the dtype-native sublane multiple.
        tile_rows = max(sublane,
                        (target_bytes // (lane * itemsize)) // sublane * sublane)
        if num_cores > 1:
            # Multi-TC chips: aim for >= 2 blocks per TensorCore so both cores
            # stream from HBM; single-TC chips keep the largest block.
            per_core = max(sublane,
                           (rows // (2 * num_cores)) // sublane * sublane)
            tile_rows = min(tile_rows, per_core)
        tile_rows = min(tile_rows, rows)

    grid = (pl.cdiv(rows, tile_rows),)        # ragged last block masked by Pallas

    cp_kwargs = dict(dimension_semantics=("parallel",))
    if vmem_limit is not None:
        cp_kwargs["vmem_limit_bytes"] = int(vmem_limit)

    cost = pl.CostEstimate(
        flops=3 * n_work,
        transcendentals=n_work,
        bytes_accessed=2 * n_work * itemsize,
    )

    return pl.pallas_call(
        functools.partial(_swish_kernel, beta=float(beta)),
        out_shape=jax.ShapeDtypeStruct((rows, lane), dtype),
        grid_spec=pltpu.PrefetchScalarGridSpec(
            num_scalar_prefetch=0,
            grid=grid,
            in_specs=[pl.BlockSpec((tile_rows, lane), lambda i: (i, 0))],
            out_specs=pl.BlockSpec((tile_rows, lane), lambda i: (i, 0)),
        ),
        compiler_params=pltpu.CompilerParams(**cp_kwargs),
        cost_estimate=cost,
    )(x2).reshape(-1)


def _swish_ref(x: jnp.ndarray, beta: float) -> jnp.ndarray:
    """Plain-jnp Swish mirroring the kernel's upcast behaviour (tiny tails)."""
    xc = x.astype(jnp.float32) if jnp.dtype(x.dtype).itemsize < 4 else x
    return (xc * jax.nn.sigmoid(xc * beta)).astype(x.dtype)


# ----------------------------------------------------------------------------
# Public wrapper
# ----------------------------------------------------------------------------
def swish(x: jnp.ndarray, beta: float = 1.0) -> jnp.ndarray:
    """Elementwise Swish (x * sigmoid(beta * x)) via Pallas. Any shape."""
    orig_shape = x.shape
    n = x.size
    if n == 0:
        return x

    xf = jnp.reshape(x, (-1,))                # contiguous flatten: no copy

    if n % 128 == 0:
        # Fast path: typical NN shapes — pure free reshapes around the kernel.
        return jnp.reshape(_swish_flat_aligned(xf, beta), orig_shape)

    n_main = (n // 128) * 128
    if n_main == 0:
        # Tiny unaligned tensor: a kernel launch is not worth it.
        return jnp.reshape(_swish_ref(xf, beta), orig_shape)

    # Unaligned: kernel on the aligned prefix, <128-element tail in plain jnp.
    out_main = _swish_flat_aligned(xf[:n_main], beta)
    out_tail = _swish_ref(xf[n_main:], beta)
    return jnp.reshape(jnp.concatenate([out_main, out_tail]), orig_shape)


if __name__ == "__main__":
    key = jax.random.PRNGKey(0)
    # NCHW input, consistent with typical conv-model usage of Swish.
    x = jax.random.normal(key, (2, 4, 16, 16), dtype=jnp.float32)
    beta = 1.0

    y = swish(x, beta=beta)
    y = jax.block_until_ready(y)

    # Reference check against plain JAX.
    y_ref = x * jax.nn.sigmoid(x * beta)
    assert y.shape == x.shape and y.dtype == x.dtype
    assert jnp.allclose(y, y_ref, atol=1e-6, rtol=1e-6)

    print("KERNEL_OK")
</pallas_src>

<mosaic_0001>
module attributes {stable_mosaic.version = 11 : i64} {
  func.func @_swish_kernel(%arg0: i32, %arg1: memref<8x256xf32, #tpu.memory_space<vmem>>, %arg2: memref<8x256xf32, #tpu.memory_space<vmem>>) attributes {dimension_semantics = [#tpu.dimension_semantics<parallel>], iteration_bounds = array<i64: 1>, scalar_prefetch = 0 : i64, scratch_operands = 0 : i64, tpu.core_type = #tpu.core_type<tc>, window_params = [{transform_indices = @transform_0, window_bounds = array<i64: 8, 256>}, {transform_indices = @transform_1, window_bounds = array<i64: 8, 256>}]} {
    %c0 = arith.constant 0 : index
    %c0_0 = arith.constant 0 : index
    %0 = vector.load %arg1[%c0, %c0_0] : memref<8x256xf32, #tpu.memory_space<vmem>>, vector<8x256xf32>
    %cst = arith.constant 1.000000e+00 : f32
    %1 = vector.broadcast %cst : f32 to vector<8x256xf32>
    %2 = arith.mulf %0, %1 : vector<8x256xf32>
    %3 = arith.negf %2 : vector<8x256xf32>
    %4 = math.exp %3 : vector<8x256xf32>
    %cst_1 = arith.constant 1.000000e+00 : f32
    %5 = vector.broadcast %cst_1 : f32 to vector<8x256xf32>
    %6 = arith.addf %5, %4 : vector<8x256xf32>
    %7 = arith.divf %5, %6 : vector<8x256xf32>
    %8 = arith.mulf %0, %7 : vector<8x256xf32>
    %c0_2 = arith.constant 0 : index
    %c0_3 = arith.constant 0 : index
    %9 = vector.load %arg2[%c0_2, %c0_3] : memref<8x256xf32, #tpu.memory_space<vmem>>, vector<8x256xf32>
    tpu.vector_store %arg2[%c0_2, %c0_3], %8 {strides = array<i32>} : memref<8x256xf32, #tpu.memory_space<vmem>>, vector<8x256xf32>,
    return
  }
  func.func @transform_0(%arg0: i32) -> (i32, i32) {
    %c0_i32 = arith.constant 0 : i32
    %c0_i32_0 = arith.constant 0 : i32
    return %arg0, %c0_i32 : i32, i32
  }
  func.func @transform_1(%arg0: i32) -> (i32, i32) {
    %c0_i32 = arith.constant 0 : i32
    %c0_i32_0 = arith.constant 0 : i32
    return %arg0, %c0_i32 : i32, i32
  }
}

</mosaic_0001>

<bundles_post_ra>
// kernel: tpu_custom_call.1
= control target key start
LH: loop header
LB: loop body
LE: loop exit
PB: predicated region body
PF: predicated region fallthrough
CT: control target
= control target key end

     0   :  { %6 = vsyncpa [#allocation3], 0  ;;  %s128_s0 = inlined_call_operand.hbm [shape: f32[8,256], index: 0, kind: input, shape index: {}]   ;;  %s129_s1 = inlined_call_operand.hbm [shape: f32[8,256], index: 1, kind: output, shape index: {}]  }
   0x1   :  { %7 = vsyncpa [#allocation4], 0  ;;  %s110_s6 = smov [#allocation2]  }
   0x2   :  { %s14_s7 = sshll.u32 %s110_s6, 4  ;;  %s15_s7 = int_to_ptr.vmem [resolvable:$true] %s14_s7 }
   0x3   :  { %s74_s8 = scalar_lea.vmem %s15_s7, 256  ;;  %p79_p1 = scmp.lt.s32.totalorder %s15_s7, %s15_s7 }
   0x4   :  { %p75_p0 = scmp.ne.s32.totalorder %s15_s7, %s74_s8  ;;  %p80_p2 = scmp.lt.s32.totalorder %s74_s8, %s74_s8 }
   0x6   :  { %p81_p3 = por %p80_p2, %p79_p1 }
   0x8   :  { %p82_p4 = pnand %p81_p3, %p75_p0 }
   0xa   :  { %85 = shalt.err (!%p82_p4)
}
   0xb   :  { %17 = dma.hbm_to_vmem [thread:$0]  %s128_s0, 256, %s15_s7, [#allocation3]  }
   0xc   :  { %106 = dma.done.wait [#allocation3], 256  }
   0xd   :  { %107 = vsyncadd [#allocation3], 4294967040  ;;  %v21_v0 = vld [vmem:[#allocation2] sm:$0xff]  ;;  %v22_v1 = vld [vmem:[#allocation2 + $0x8] sm:$0xff]  ;;  %s111_s11 = smov [#allocation5]  }
   0xe   :  { %v54_v2 = vmul.f32 -1.442695, %v21_v0  ;;  %v55_v3 = vmul.f32 -1.442695, %v22_v1  ;;  %s45_s12 = sshll.u32 %s111_s11, 4  ;;  %s46_s12 = int_to_ptr.vmem [resolvable:$true] %s45_s12 }
   0xf   :  { %s86_s0 = scalar_lea.vmem %s46_s12, 256  ;;  %p91_p6 = scmp.lt.s32.totalorder %s46_s12, %s46_s12 }
  0x10   :  { %58 = vpow2.f32 %v54_v2  ;;  %p87_p5 = scmp.ne.s32.totalorder %s46_s12, %s86_s0  ;;  %p92_p7 = scmp.lt.s32.totalorder %s86_s0, %s86_s0 }
  0x11   :  { %60 = vpow2.f32 %v55_v3 }
  0x12   :  { %p93_p8 = por %p92_p7, %p91_p6 }
  0x14   :  { %p94_p9 = pnand %p93_p8, %p87_p5 }
  0x1d   :  { %v59_v4 = vpop.eup %58 }
  0x1e   :  { %v61_v5 = vpop.eup %60  ;;  %v29_v6 = vadd.f32 1.0, %v59_v4 }
  0x1f   :  { %v30_v7 = vadd.f32 1.0, %v61_v5 }
  0x20   :  { %62 = vrcp.f32 %v29_v6 }
  0x21   :  { %64 = vrcp.f32 %v30_v7 }
  0x2d   :  { %v63_v8 = vpop.eup %62 }
  0x2e   :  { %v65_v9 = vpop.eup %64  ;;  %v35_v10 = vmul.f32 %v63_v8, %v21_v0 }
  0x2f   :  { %v36_v11 = vmul.f32 %v65_v9, %v22_v1 }
  0x30   :  { %37 = vst [vmem:[#allocation5] sm:$0xff] %v35_v10 }
  0x31   :  { %38 = vst [vmem:[#allocation5 + $0x8] sm:$0xff] %v36_v11 }
  0x32   :  { %97 = shalt.err (!%p94_p9)
}
  0x33   :  { %48 = dma.vmem_to_hbm [thread:$0]  %s46_s12, 256, %s129_s1, [#allocation4]  }
  0x34   :  { %108 = dma.done.wait [#allocation4], 256  }
  0x35   :  { %109 = vsyncadd [#allocation4], 4294967040 }
  0x36   :  { %52 = vsyncpa [#allocation3], 1 }
  0x37   :  { %53 = vsyncpa [#allocation4], 1 }

</bundles_post_ra>
